<compile_context>
chip_gen: v5e
topology: v5e:2x2
jax: 0.10.0
libtpu: 0.0.40
codegen_flags: <defaults>
</compile_context>

<pallas_src>
import functools
import math

import jax
import jax.numpy as jnp
from jax.experimental import pallas as pl
from jax.experimental.pallas import tpu as pltpu


def _round_up(n, m):
    return ((n + m - 1) // m) * m


def _pick_tile(dim, pref, align):
    """Largest multiple of `align` that divides `dim` and is <= pref,
    otherwise the full dimension (full-extent blocks are always legal)."""
    if dim <= pref or dim % align != 0:
        return dim
    t = (pref // align) * align
    while t >= align:
        if dim % t == 0:
            return t
        t -= align
    return dim


# --------------------------------------------------------------------------
# Stage 1: support = x @ W   (hoisted over all B*N rows, lane-padded Fout)
# --------------------------------------------------------------------------
def support_kernel(x_ref, w_ref, o_ref):
    o_ref[...] = jnp.dot(
        x_ref[...], w_ref[...], preferred_element_type=jnp.float32
    ).astype(o_ref.dtype)


def _compute_support(x, w_padded, out_dtype, row_tile=512):
    B, N, Fin = x.shape
    Fp = w_padded.shape[1]
    BN = B * N
    xs = x.reshape(BN, Fin)
    tr = _pick_tile(BN, row_tile, 8)

    sup = pl.pallas_call(
        support_kernel,
        out_shape=jax.ShapeDtypeStruct((BN, Fp), out_dtype),
        grid_spec=pltpu.PrefetchScalarGridSpec(
            num_scalar_prefetch=0,
            grid=(BN // tr,),
            in_specs=[
                pl.BlockSpec((tr, Fin), lambda r: (r, 0)),
                pl.BlockSpec((Fin, Fp), lambda r: (0, 0)),
            ],
            out_specs=pl.BlockSpec((tr, Fp), lambda r: (r, 0)),
        ),
        compiler_params=pltpu.CompilerParams(
            dimension_semantics=("parallel",),
        ),
    )(xs, w_padded)
    return sup.reshape(B, N, Fp)


# --------------------------------------------------------------------------
# Stage 2: out = binarize(adj + adj^T) @ support + bias   (tiled reduction)
# --------------------------------------------------------------------------
def gcn_agg_kernel(adj_ref, adjT_ref, sup_ref, bias_ref, o_ref, acc_ref,
                   *, mxu_dtype):
    # adj_ref : (tm, tk)  f32   adj[b, i*tm:+tm, k*tk:+tk]
    # adjT_ref: (tk, tm)  f32   adj[b, k*tk:+tk, i*tm:+tm]  (transposed view)
    # sup_ref : (tk, Fp)  mxu_dtype
    # bias_ref: (1,  Fp)  f32
    # o_ref   : (tm, Fp)
    # acc_ref : (tm, Fp)  f32 scratch
    k = pl.program_id(2)

    @pl.when(k == 0)
    def _init():
        # Fold the bias add into the accumulator init.
        acc_ref[...] = jnp.broadcast_to(bias_ref[...], acc_ref.shape)

    # Symmetrize + binarize this tile only (tile-local transpose, cheap XLU).
    adj_sym = adj_ref[...] + adjT_ref[...].T
    adj_bin = jnp.where(adj_sym > 0.0,
                        jnp.ones_like(adj_sym),
                        jnp.zeros_like(adj_sym)).astype(mxu_dtype)

    # bf16 x bf16 -> f32 accumulation on the MXU (adj_bin is exact in bf16).
    acc_ref[...] += jnp.dot(adj_bin, sup_ref[...].astype(mxu_dtype),
                            preferred_element_type=jnp.float32)

    @pl.when(k == pl.num_programs(2) - 1)
    def _finish():
        o_ref[...] = acc_ref[...].astype(o_ref.dtype)


def gcn_forward(x, adj, weight, bias=None, *, mxu_dtype=jnp.bfloat16,
                row_tile=256, k_tile=256):
    """GCN layer forward (directed=False path of the PyTorch module)."""
    B, N, Fin = x.shape
    Fin_w, Fout = weight.shape
    assert Fin == Fin_w, "x feature dim must match weight rows"

    # Lane-dense output: pad Fout up to a multiple of 128, slice afterwards.
    Fp = _round_up(Fout, 128)
    w_p = weight if Fp == Fout else jnp.pad(weight, ((0, 0), (0, Fp - Fout)))
    if bias is None:
        b_p = jnp.zeros((1, Fp), jnp.float32)
    else:
        b_p = jnp.pad(bias.astype(jnp.float32), (0, Fp - Fout)).reshape(1, Fp)

    # Stage 1: support for the whole batch in one hoisted matmul.
    support = _compute_support(x, w_p, mxu_dtype)

    # Stage 2: tiled aggregation.  tm/tk must be multiples of 128 (they each
    # appear as a lane dim in one of the two adj views) or the full N.
    tm = _pick_tile(N, row_tile, 128)
    tk = _pick_tile(N, k_tile, 128)
    grid = (B, N // tm, N // tk)

    kernel = functools.partial(gcn_agg_kernel, mxu_dtype=mxu_dtype)

    out_p = pl.pallas_call(
        kernel,
        out_shape=jax.ShapeDtypeStruct((B, N, Fp), x.dtype),
        grid_spec=pltpu.PrefetchScalarGridSpec(
            num_scalar_prefetch=0,
            grid=grid,
            in_specs=[
                # adj tile: rows of this output block, cols of this k-block.
                pl.BlockSpec((None, tm, tk), lambda b, i, k: (b, i, k)),
                # Transposed view of adj (rows k, cols i) -> only a tile-local
                # transpose is needed in the kernel, never a full NxN one.
                pl.BlockSpec((None, tk, tm), lambda b, i, k: (b, k, i)),
                # support tile for this k-block.
                pl.BlockSpec((None, tk, Fp), lambda b, i, k: (b, k, 0)),
                # bias (lane-padded), constant across the grid.
                pl.BlockSpec((1, Fp), lambda b, i, k: (0, 0)),
            ],
            out_specs=pl.BlockSpec((None, tm, Fp), lambda b, i, k: (b, i, 0)),
            scratch_shapes=[pltpu.VMEM((tm, Fp), jnp.float32)],
        ),
        compiler_params=pltpu.CompilerParams(
            # B and the row-tile axis shard across TensorCores (v7x megacore);
            # the contraction axis carries the accumulator -> "arbitrary".
            dimension_semantics=("parallel", "parallel", "arbitrary"),
            vmem_limit_bytes=32 * 1024 * 1024,
        ),
    )(adj, adj, support, b_p)

    return out_p[:, :, :Fout] if Fp != Fout else out_p


def reference_forward(x, adj, weight, bias):
    adj_sym = adj + jnp.swapaxes(adj, 1, 2)
    adj_bin = jnp.where(adj_sym > 0, jnp.ones_like(adj_sym),
                        jnp.zeros_like(adj_sym))
    out = adj_bin @ (x @ weight)
    return out + bias


if __name__ == "__main__":
    # Small shapes consistent with the module: batch=2, nodes=16,
    # in_features=8, out_features=32.
    B, N, Fin, Fout = 2, 16, 8, 32

    key = jax.random.PRNGKey(0)
    kx, kadj, kw, kb = jax.random.split(key, 4)

    # Parameter init mirroring reset_parameters(): U(-stdv, stdv),
    # stdv = 1/sqrt(out_features).
    stdv = 1.0 / math.sqrt(Fout)
    weight = jax.random.uniform(kw, (Fin, Fout), jnp.float32, -stdv, stdv)
    bias = jax.random.uniform(kb, (Fout,), jnp.float32, -stdv, stdv)

    x = jax.random.normal(kx, (B, N, Fin), jnp.float32)
    # Random (possibly asymmetric) adjacency with ~30% density.
    adj = (jax.random.uniform(kadj, (B, N, N)) < 0.3).astype(jnp.float32)

    # Optimized default path (bf16 MXU for adj_bin @ support, f32 accum).
    out_bf16 = gcn_forward(x, adj, weight, bias)
    # Exact path (f32 MXU) to verify bit-level semantics against the module.
    out_f32 = gcn_forward(x, adj, weight, bias, mxu_dtype=jnp.float32)
    out_bf16, out_f32 = jax.block_until_ready((out_bf16, out_f32))

    ref = reference_forward(x, adj, weight, bias)
    assert out_bf16.shape == (B, N, Fout)
    assert out_f32.shape == (B, N, Fout)
    assert jnp.allclose(out_f32, ref, atol=1e-5, rtol=1e-5), \
        "f32 path mismatch vs reference"
    # bf16 support introduces ~1e-3 relative rounding (adj_bin itself is
    # exact 0/1 in bf16); accumulation stays f32.
    assert jnp.allclose(out_bf16, ref, atol=5e-2, rtol=1e-2), \
        "bf16 path mismatch vs reference"

    print("KERNEL_OK")
</pallas_src>

<mosaic_0001>
module attributes {stable_mosaic.version = 11 : i64} {
  func.func @support_kernel(%arg0: i32, %arg1: memref<32x8xf32, #tpu.memory_space<vmem>>, %arg2: memref<8x128xf32, #tpu.memory_space<vmem>>, %arg3: memref<32x128xbf16, #tpu.memory_space<vmem>>) attributes {dimension_semantics = [#tpu.dimension_semantics<parallel>], iteration_bounds = array<i64: 1>, scalar_prefetch = 0 : i64, scratch_operands = 0 : i64, tpu.core_type = #tpu.core_type<tc>, window_params = [{transform_indices = @transform_0, window_bounds = array<i64: 32, 8>}, {pipeline_mode = #tpu.pipeline_mode<synchronous>, transform_indices = @transform_1, window_bounds = array<i64: 8, 128>}, {transform_indices = @transform_2, window_bounds = array<i64: 32, 128>}]} {
    %c0 = arith.constant 0 : index
    %c0_0 = arith.constant 0 : index
    %0 = vector.load %arg1[%c0, %c0_0] : memref<32x8xf32, #tpu.memory_space<vmem>>, vector<32x8xf32>
    %c0_1 = arith.constant 0 : index
    %c0_2 = arith.constant 0 : index
    %1 = vector.load %arg2[%c0_1, %c0_2] : memref<8x128xf32, #tpu.memory_space<vmem>>, vector<8x128xf32>
    %cst = arith.constant dense<0.000000e+00> : vector<32x128xf32>
    %2 = tpu.matmul %0, %1, %cst {dimension_numbers = #tpu.dot_dimension_numbers<[1], [0], [0], [1], [0, 0, 1, 1], [], []>} : vector<32x8xf32>, vector<8x128xf32>, vector<32x128xf32> -> vector<32x128xf32>
    %3 = arith.truncf %2 : vector<32x128xf32> to vector<32x128xbf16>
    %c0_3 = arith.constant 0 : index
    %c0_4 = arith.constant 0 : index
    %4 = vector.load %arg3[%c0_3, %c0_4] : memref<32x128xbf16, #tpu.memory_space<vmem>>, vector<32x128xbf16>
    tpu.vector_store %arg3[%c0_3, %c0_4], %3 {strides = array<i32>} : memref<32x128xbf16, #tpu.memory_space<vmem>>, vector<32x128xbf16>,
    return
  }
  func.func @transform_0(%arg0: i32) -> (i32, i32) {
    %c0_i32 = arith.constant 0 : i32
    %c0_i32_0 = arith.constant 0 : i32
    return %arg0, %c0_i32 : i32, i32
  }
  func.func @transform_1(%arg0: i32) -> (i32, i32) {
    %c0_i32 = arith.constant 0 : i32
    %c0_i32_0 = arith.constant 0 : i32
    %c0_i32_1 = arith.constant 0 : i32
    return %c0_i32, %c0_i32_0 : i32, i32
  }
  func.func @transform_2(%arg0: i32) -> (i32, i32) {
    %c0_i32 = arith.constant 0 : i32
    %c0_i32_0 = arith.constant 0 : i32
    return %arg0, %c0_i32 : i32, i32
  }
}

</mosaic_0001>

<bundles_post_ra>
// kernel: tpu_custom_call.1
= control target key start
LH: loop header
LB: loop body
LE: loop exit
PB: predicated region body
PF: predicated region fallthrough
CT: control target
= control target key end

     0   :  { %vm17_vm0 = vcmask 64512   ;;  %s168_s0 = inlined_call_operand.vmem [shape: f32[32,8], index: 0, kind: input, shape index: {}]   ;;  %s169_s1 = inlined_call_operand.vmem [shape: f32[8,128], index: 1, kind: input, shape index: {}]   ;;  %s170_s2 = inlined_call_operand.hbm [shape: bf16[32,128], index: 2, kind: output, shape index: {}]  }
   0x1   :  { %v16_v0 = vld [vmem:[%s169_s1] sm:$0xff]  ;;  %v14_v1 = vld [vmem:[%s168_s0 + $0x10] sm:$0xff]  ;;  %v15_v2 = vld [vmem:[%s168_s0 + $0x18] sm:$0xff] }
   0x2   :  { %101 = vmatpush.msra.mxu2 %v16_v0  ;;  %102 = vmatpush.msra.mxu3 %v16_v0  ;;  %v12_v3 = vld [vmem:[%s168_s0] sm:$0xff]  ;;  %v13_v4 = vld [vmem:[%s168_s0 + $0x8] sm:$0xff] }
   0x3   :  { %7 = vsyncpa [#allocation3], 0  ;;  %87 = vmatmul.msk.f32.vlgmr.msra.gmra.mxu2 %vm17_vm0, %v14_v1  ;;  %88 = vmatmul.msk.f32.vlgmr.msra.gmra.mxu3 %vm17_vm0, %v15_v2  ;;  %s132_s1 = smov [#allocation2]   ;;  %s73_s22 = sshll.u32 %s170_s2, 4  ;;  %s74_s22 = int_to_ptr.hbm [resolvable:$true] %s73_s22 }
   0x4   :  { %45 = vmatpush.msra.mxu0 %v16_v0  ;;  %100 = vmatpush.msra.mxu1 %v16_v0  ;;  %s71_s19 = sshll.u32 %s132_s1, 4  ;;  %s133_s0 = smov 64   ;;  %s72_s19 = int_to_ptr.vmem [resolvable:$true] %s71_s19 }
   0x5   :  { %85 = vmatmul.msk.f32.vlgmr.msra.gmra.mxu0 %vm17_vm0, %v12_v3  ;;  %86 = vmatmul.msk.f32.vlgmr.msra.gmra.mxu1 %vm17_vm0, %v13_v4  ;;  %s134_s23 = smov 4  }
  0x82   :  { %v47_v5 = vpop.f32.mrf.mxu0  ;;  %v50_v6 = vpop.f32.mrf.mxu1 }
  0x83   :  { %v92_v7 = vpack.c.bf16 %v50_v6, %v47_v5 }
  0x85   :  { %93 = vst [vmem:[#allocation2] sm:$0xff] %v92_v7  }
  0x86   :  { %v53_v8 = vpop.f32.mrf.mxu2  ;;  %v56_v9 = vpop.f32.mrf.mxu3 }
  0x87   :  { %v97_v10 = vpack.c.bf16 %v56_v9, %v53_v8 }
  0x89   :  { %99 = vst [vmem:[#allocation2 + $0x8] sm:$0xff] %v97_v10  }
  0x8a   :  { %79 = dma.vmem_to_hbm [thread:$0]  %s72_s19, 256, %s74_s22, [#allocation3], %s133_s0, %s133_s0, %s134_s23  }
  0x8b   :  { %130 = dma.done.wait [#allocation3], 256  }
  0x8c   :  { %131 = vsyncadd [#allocation3], 4294967040 }
  0x8d   :  { %84 = vsyncpa [#allocation3], 1 }

</bundles_post_ra>
